<compile_context>
chip_gen: v7x
topology: tpu7x:2x2x1
jax: 0.10.0
libtpu: 0.0.40
codegen_flags: <defaults>
</compile_context>

<pallas_src>
import functools
import math

import jax
import jax.numpy as jnp
import numpy as np
from jax.experimental import pallas as pl
from jax.experimental.pallas import tpu as pltpu


def _round_up(x, m):
    return -(-x // m) * m


# ----------------------------------------------------------------------------
# LSG input construction (glue, plain JAX) — mirrors reshape_to_local_block /
# reshape_to_sparse_block / cat_global_sparse_local_tokens in PyTorch.
# ----------------------------------------------------------------------------
def reshape_to_local_block(x, block_size, is_attn_mask=False):
    size, step = block_size * 3, block_size
    s = (size - step) // 2
    pad_value = -10000.0 if is_attn_mask else 0.0
    if is_attn_mask:
        x = jnp.swapaxes(x, -1, -2)          # (n,h,t,1)
    pad_width = [(0, 0)] * (x.ndim - 2) + [(s, s), (0, 0)]
    x = jnp.pad(x, pad_width, constant_values=pad_value)
    n_windows = (x.shape[-2] - size) // step + 1
    idx = jnp.arange(n_windows)[:, None] * step + jnp.arange(size)[None, :]
    # torch unfold(-2) + transpose(-1,-2)  ->  (..., n_windows, size, d)
    return x[..., idx, :]


def reshape_to_sparse_block(x, block_size, sparse_block_size, sparsity_factor,
                            is_attn_mask=False):
    size, step = sparse_block_size * 3, block_size // sparsity_factor
    odd_offset = step % 2
    size = size * 2
    s = (size - step) // 2 + odd_offset
    pad_value = -10000.0 if is_attn_mask else 0.0
    if is_attn_mask:
        x = jnp.swapaxes(x, -1, -2)
    pad_width = [(0, 0)] * (x.ndim - 2) + [(s, s), (0, 0)]
    x = jnp.pad(x, pad_width, constant_values=pad_value)
    n_windows = (x.shape[-2] - size) // step + 1
    idx = jnp.arange(n_windows)[:, None] * step + jnp.arange(size)[None, :]
    x = x[..., idx, :]                        # (..., n_windows, size, d)
    if odd_offset:
        x = x[..., :-1, :, :]
    u = (size - block_size * 3 // sparsity_factor) // 2 + odd_offset
    sb = sparse_block_size
    u_ = u + odd_offset
    L = x.shape[-2]
    left = x[..., u - sb:u, :]
    right = x[..., L - u_:L - u_ + sb, :]
    return jnp.concatenate([left, right], axis=-2)


def cat_global_sparse_local_tokens(x_global, x_sparse, x_local):
    n, h, b, t, d = x_local.shape
    g = x_global.shape[-2]
    xg = jnp.broadcast_to(x_global[..., None, :, :], (n, h, b, g, x_global.shape[-1]))
    if x_sparse is not None:
        return jnp.concatenate([xg, x_sparse, x_local], axis=-2)
    return jnp.concatenate([xg, x_local], axis=-2)


def build_lsg_inputs(x, x_sparse, x_global, block_size, sparse_block_size,
                     sparsity_factor, is_attn_mask=False):
    x_local = reshape_to_local_block(x, block_size, is_attn_mask)
    if x_sparse is not None:
        x_sparse = reshape_to_sparse_block(x_sparse, block_size, sparse_block_size,
                                           sparsity_factor, is_attn_mask)
    return cat_global_sparse_local_tokens(x_global, x_sparse, x_local)


# ----------------------------------------------------------------------------
# Pallas kernel: softmax(Q @ K^T / sqrt(d) + mask) @ V over a batch of B
# attention blocks per grid step (dropout p=0 == identity).
# ----------------------------------------------------------------------------
def _attn_kernel(q_ref, kt_ref, v_ref, m_ref, o_ref, *, scale):
    q = q_ref[...]                                   # (B, Bq, d)   compute dtype
    kt = kt_ref[...]                                 # (B, d, Kp)   lane-dense K^T
    v = v_ref[...]                                   # (B, Kp, d)   compute dtype
    m = m_ref[...]                                   # (B, Kp)      f32 additive mask

    # Q @ K^T contracting d against the lane-dense K^T tile: MXU sees
    # (M=Bq, K=d, N=Kp) with no operand relayout; f32 accumulation.
    s = jnp.einsum("bqd,bdk->bqk", q, kt,
                   preferred_element_type=jnp.float32)           # (B, Bq, Kp)
    # 1/sqrt(d) applied to the f32 score tile (exact; VPU has slack in a
    # memory-bound kernel), then the additive mask broadcast over Bq.
    s = s * scale + m[:, None, :]
    s = s - jnp.max(s, axis=-1, keepdims=True)
    p = jnp.exp(s)
    denom = jnp.sum(p, axis=-1, keepdims=True)
    p = p * pl.reciprocal(denom, approx=False)                   # EUP, exact

    o = jnp.einsum("bqk,bkd->bqd", p.astype(v.dtype), v,
                   preferred_element_type=jnp.float32)           # (B, Bq, d)
    o_ref[...] = o.astype(o_ref.dtype)


def _vmem_plan():
    """Generation-gated (vmem_limit_bytes, single-buffered per-step budget)."""
    kind = ""
    try:
        kind = jax.devices()[0].device_kind.lower()
    except Exception:
        pass
    if "v7" in kind or "7x" in kind:
        # v7x: only 64 MiB VMEM per TensorCore -> keep the scoped limit well below.
        limit, budget = 48 * (1 << 20), 12 * (1 << 20)
    elif "v5" in kind or "v6" in kind:
        # v5e / v6e: 128 MiB physical VMEM (default scoped limit is much lower,
        # so the explicit vmem_limit_bytes matters, especially on v5e).
        limit, budget = 96 * (1 << 20), 20 * (1 << 20)
    else:
        # Unknown generation -> v7x-safe defaults.
        limit, budget = 48 * (1 << 20), 12 * (1 << 20)
    return limit, min(budget, limit // 3)


def _plan_grid(nb_total, bq, kp, d, itemsize, budget):
    """Pick (blocks-per-step, grid-steps).

    The per-block footprint accounts for (8,128) tile padding of every VMEM
    tile (d=32 minor dims pad to 128 lanes) and for the compiler-materialized
    f32 score/prob intermediates.  The grid is kept >= 2 steps and even so
    both v7x TensorCores get work; bsz is a multiple of 8 so the 2-D mask
    block is sublane-dense (and a legal BlockSpec).
    """
    lane, sub = 128, 8
    d_pad = _round_up(d, lane)
    q_tile = _round_up(bq, sub) * d_pad * itemsize            # (bq, d)
    k_tile = _round_up(d, sub) * _round_up(kp, lane) * itemsize   # (d, kp) lane-dense
    v_tile = _round_up(kp, sub) * d_pad * itemsize            # (kp, d)
    o_tile = q_tile
    m_tile = _round_up(kp, lane) * 4                          # one f32 mask row
    inter = 3 * _round_up(bq, sub) * _round_up(kp, lane) * 4  # f32 scores/probs
    per_block = q_tile + k_tile + v_tile + o_tile + m_tile + inter

    bsz_max = max(8, budget // per_block)
    steps = max(1, -(-nb_total // bsz_max))
    if nb_total > 8:
        steps = max(steps, 2)            # keep both v7x TensorCores busy
    if steps > 1 and steps % 2:
        steps += 1                       # even step count for 2-TC sharding
    bsz = _round_up(-(-nb_total // steps), 8)
    return int(bsz), int(steps)


def lsg_block_attention(q_blocks, k_blocks, v_blocks, mask_blocks):
    """q_blocks: (n,h,nb,Bq,d); k/v_blocks: (n,h,nb,Kk,d); mask: (n,h,nb,1,Kk)."""
    n, h, nb, bq, d = q_blocks.shape
    kk = k_blocks.shape[-2]
    nb_total = n * h * nb
    dtype = q_blocks.dtype

    qf = q_blocks.reshape(nb_total, bq, d)
    # Lane-dense K^T (nb, d, Kp): swapaxes + pad sit next to each other so XLA
    # fuses them into the single copy pass the Kp pad already required.
    ktf = jnp.swapaxes(k_blocks.reshape(nb_total, kk, d), -1, -2)   # (nb, d, kk)
    vf = v_blocks.reshape(nb_total, kk, d)
    mf = mask_blocks.reshape(nb_total, kk).astype(jnp.float32)      # 2-D mask

    # Pad Kk up to a lane multiple (128): zero K/V, very negative mask so the
    # padded columns contribute exactly 0 to the softmax.
    lane = 128
    kp = _round_up(kk, lane)
    pad_k = kp - kk
    if pad_k:
        ktf = jnp.pad(ktf, ((0, 0), (0, 0), (0, pad_k)))
        vf = jnp.pad(vf, ((0, 0), (0, pad_k), (0, 0)))
        mf = jnp.pad(mf, ((0, 0), (0, pad_k)), constant_values=-1e9)

    vmem_limit, budget = _vmem_plan()
    bsz, steps = _plan_grid(nb_total, bq, kp, d, jnp.dtype(dtype).itemsize, budget)
    nb_pad = bsz * steps
    extra = nb_pad - nb_total
    if extra:
        # Dummy blocks: zero Q/K/V, zero mask -> uniform softmax over zero V
        # -> zero output, discarded below.
        qf = jnp.pad(qf, ((0, extra), (0, 0), (0, 0)))
        ktf = jnp.pad(ktf, ((0, extra), (0, 0), (0, 0)))
        vf = jnp.pad(vf, ((0, extra), (0, 0), (0, 0)))
        mf = jnp.pad(mf, ((0, extra), (0, 0)))

    scale = 1.0 / math.sqrt(d)
    kernel = functools.partial(_attn_kernel, scale=scale)

    out = pl.pallas_call(
        kernel,
        out_shape=jax.ShapeDtypeStruct((nb_pad, bq, d), dtype),
        grid=(steps,),
        in_specs=[
            pl.BlockSpec((bsz, bq, d), lambda i: (i, 0, 0)),
            pl.BlockSpec((bsz, d, kp), lambda i: (i, 0, 0)),
            pl.BlockSpec((bsz, kp, d), lambda i: (i, 0, 0)),
            pl.BlockSpec((bsz, kp), lambda i: (i, 0)),
        ],
        out_specs=pl.BlockSpec((bsz, bq, d), lambda i: (i, 0, 0)),
        compiler_params=pltpu.CompilerParams(
            dimension_semantics=("parallel",),
            vmem_limit_bytes=vmem_limit,
        ),
    )(qf, ktf, vf, mf)

    if extra:
        out = out[:nb_total]
    return out.reshape(n, h, nb, bq, d)


# ----------------------------------------------------------------------------
# Full LSGAttentionProduct.forward (non-causal, attention_dropout = 0)
# ----------------------------------------------------------------------------
def lsg_attention_product(query_layer, key_layer, value_layer, attention_mask,
                          sparse_key, sparse_value, sparse_mask,
                          global_key, global_value, global_mask,
                          block_size, sparse_block_size, sparsity_factor,
                          compute_dtype=jnp.bfloat16):
    n, h, t, d = query_layer.shape
    assert t % block_size == 0
    n_blocks = t // block_size
    out_dtype = query_layer.dtype

    # Cast Q/K/V (and sparse/global) to the compute dtype *before* the blocked
    # gather so the ~3-5x expanded arrays are materialized at half the bytes;
    # softmax math stays f32 inside the kernel.  Mask stays f32.
    cd = compute_dtype if compute_dtype is not None else out_dtype
    cast = lambda x: None if x is None else x.astype(cd)
    query_layer = cast(query_layer)
    key_layer, value_layer = cast(key_layer), cast(value_layer)
    sparse_key, sparse_value = cast(sparse_key), cast(sparse_value)
    global_key, global_value = cast(global_key), cast(global_value)

    key_layer = build_lsg_inputs(key_layer, sparse_key, global_key,
                                 block_size, sparse_block_size, sparsity_factor)
    value_layer = build_lsg_inputs(value_layer, sparse_value, global_value,
                                   block_size, sparse_block_size, sparsity_factor)
    attention_mask = build_lsg_inputs(
        attention_mask, sparse_mask, jnp.swapaxes(global_mask, -1, -2),
        block_size, sparse_block_size, sparsity_factor, is_attn_mask=True)
    attention_mask = jnp.swapaxes(attention_mask, -1, -2)   # (n,h,nb,1,K)

    q_blocks = query_layer.reshape(n, h, n_blocks, block_size, d)

    ctx = lsg_block_attention(q_blocks, key_layer, value_layer, attention_mask)
    return ctx.reshape(n, h, -1, d).astype(out_dtype)


def _reference_attention(q_blocks, k_blocks, v_blocks, mask_blocks):
    d = q_blocks.shape[-1]
    s = jnp.einsum('...qd,...kd->...qk', q_blocks, k_blocks) / math.sqrt(d)
    s = s + mask_blocks
    p = jax.nn.softmax(s, axis=-1)
    return jnp.einsum('...qk,...kd->...qd', p, v_blocks)


if __name__ == "__main__":
    # Config (synthetic, no parameters to load — LSGAttentionProduct has only a
    # Dropout module, which is the identity with attention_dropout = 0).
    n, h, d = 2, 2, 32
    block_size = 16
    sparse_block_size = 16
    sparsity_factor = 4
    n_blocks = 4
    t = n_blocks * block_size                 # 64
    t_sparse = t // sparsity_factor           # 16
    g = 4                                     # number of global tokens

    key = jax.random.PRNGKey(0)
    ks = jax.random.split(key, 8)
    query_layer = jax.random.normal(ks[0], (n, h, t, d), dtype=jnp.float32)
    key_layer = jax.random.normal(ks[1], (n, h, t, d), dtype=jnp.float32)
    value_layer = jax.random.normal(ks[2], (n, h, t, d), dtype=jnp.float32)
    sparse_key = jax.random.normal(ks[3], (n, h, t_sparse, d), dtype=jnp.float32)
    sparse_value = jax.random.normal(ks[4], (n, h, t_sparse, d), dtype=jnp.float32)
    global_key = jax.random.normal(ks[5], (n, h, g, d), dtype=jnp.float32)
    global_value = jax.random.normal(ks[6], (n, h, g, d), dtype=jnp.float32)

    # Additive attention masks (0 = visible, -10000 = masked); mask out last 4 tokens.
    attention_mask = jnp.zeros((n, h, 1, t), dtype=jnp.float32)
    attention_mask = attention_mask.at[..., -4:].set(-10000.0)
    sparse_mask = jnp.zeros((n, h, 1, t_sparse), dtype=jnp.float32)
    sparse_mask = sparse_mask.at[..., -1:].set(-10000.0)
    global_mask = jnp.zeros((n, h, 1, g), dtype=jnp.float32)

    out = lsg_attention_product(query_layer, key_layer, value_layer, attention_mask,
                                sparse_key, sparse_value, sparse_mask,
                                global_key, global_value, global_mask,
                                block_size, sparse_block_size, sparsity_factor)
    out = jax.block_until_ready(out)
    assert out.shape == (n, h, t, d), out.shape

    # Sanity check vs a pure-JAX reference of the same math, built from the same
    # bf16-rounded Q/K/V (tolerance covers the f32 softmax + bf16 P@V path).
    bf = lambda x: x.astype(jnp.bfloat16).astype(jnp.float32)
    k_blk = build_lsg_inputs(bf(key_layer), bf(sparse_key), bf(global_key),
                             block_size, sparse_block_size, sparsity_factor)
    v_blk = build_lsg_inputs(bf(value_layer), bf(sparse_value), bf(global_value),
                             block_size, sparse_block_size, sparsity_factor)
    m_blk = jnp.swapaxes(
        build_lsg_inputs(attention_mask, sparse_mask, jnp.swapaxes(global_mask, -1, -2),
                         block_size, sparse_block_size, sparsity_factor,
                         is_attn_mask=True), -1, -2)
    q_blk = bf(query_layer).reshape(n, h, n_blocks, block_size, d)
    ref = _reference_attention(q_blk, k_blk, v_blk, m_blk).reshape(n, h, -1, d)
    np.testing.assert_allclose(np.asarray(out), np.asarray(ref), rtol=2e-2, atol=2e-2)

    print("KERNEL_OK")
</pallas_src>

<mosaic_0001>
module attributes {stable_mosaic.version = 11 : i64} {
  func.func @_attn_kernel(%arg0: i32, %arg1: memref<8x16x32xbf16, #tpu.memory_space<vmem>>, %arg2: memref<8x32x128xbf16, #tpu.memory_space<vmem>>, %arg3: memref<8x128x32xbf16, #tpu.memory_space<vmem>>, %arg4: memref<8x128xf32, #tpu.memory_space<vmem>>, %arg5: memref<8x16x32xbf16, #tpu.memory_space<vmem>>) attributes {dimension_semantics = [#tpu.dimension_semantics<parallel>], iteration_bounds = array<i64: 2>, scalar_prefetch = 0 : i64, scratch_operands = 0 : i64, tpu.core_type = #tpu.core_type<tc>, window_params = [{transform_indices = @transform_0, window_bounds = array<i64: 8, 16, 32>}, {transform_indices = @transform_1, window_bounds = array<i64: 8, 32, 128>}, {transform_indices = @transform_2, window_bounds = array<i64: 8, 128, 32>}, {transform_indices = @transform_3, window_bounds = array<i64: 8, 128>}, {transform_indices = @transform_4, window_bounds = array<i64: 8, 16, 32>}]} {
    %c0 = arith.constant 0 : index
    %c0_0 = arith.constant 0 : index
    %c0_1 = arith.constant 0 : index
    %0 = vector.load %arg1[%c0, %c0_0, %c0_1] : memref<8x16x32xbf16, #tpu.memory_space<vmem>>, vector<8x16x32xbf16>
    %c0_2 = arith.constant 0 : index
    %c0_3 = arith.constant 0 : index
    %c0_4 = arith.constant 0 : index
    %1 = vector.load %arg2[%c0_2, %c0_3, %c0_4] : memref<8x32x128xbf16, #tpu.memory_space<vmem>>, vector<8x32x128xbf16>
    %c0_5 = arith.constant 0 : index
    %c0_6 = arith.constant 0 : index
    %c0_7 = arith.constant 0 : index
    %2 = vector.load %arg3[%c0_5, %c0_6, %c0_7] : memref<8x128x32xbf16, #tpu.memory_space<vmem>>, vector<8x128x32xbf16>
    %c0_8 = arith.constant 0 : index
    %c0_9 = arith.constant 0 : index
    %3 = vector.load %arg4[%c0_8, %c0_9] : memref<8x128xf32, #tpu.memory_space<vmem>>, vector<8x128xf32>
    "tpu.trace_start"() <{level = 10 : i32, message = "bqd,bdk->bqk"}> : () -> ()
    %cst = arith.constant dense<0.000000e+00> : vector<8x16x128xf32>
    %4 = tpu.matmul %0, %1, %cst {dimension_numbers = #tpu.dot_dimension_numbers<[2], [1], [1], [2], [0, 0, 0, 1, 1, 2], [0], [0]>} : vector<8x16x32xbf16>, vector<8x32x128xbf16>, vector<8x16x128xf32> -> vector<8x16x128xf32>
    "tpu.trace_stop"() : () -> ()
    %cst_10 = arith.constant 0.176776692 : f32
    %5 = vector.broadcast %cst_10 : f32 to vector<8x16x128xf32>
    %6 = arith.mulf %4, %5 : vector<8x16x128xf32>
    %7 = vector.shape_cast %3 : vector<8x128xf32> to vector<8x1x128xf32>
    %8 = vector.broadcast %7 : vector<8x1x128xf32> to vector<8x16x128xf32>
    %9 = arith.addf %6, %8 : vector<8x16x128xf32>
    %cst_11 = arith.constant dense<0xFF800000> : vector<8x16xf32>
    %10 = vector.multi_reduction <maximumf>, %9, %cst_11 [2] : vector<8x16x128xf32> to vector<8x16xf32>
    %11 = vector.shape_cast %10 : vector<8x16xf32> to vector<8x16x1xf32>
    %12 = vector.broadcast %11 : vector<8x16x1xf32> to vector<8x16x128xf32>
    %13 = arith.subf %9, %12 : vector<8x16x128xf32>
    %14 = math.exp %13 : vector<8x16x128xf32>
    %cst_12 = arith.constant dense<0.000000e+00> : vector<8x16xf32>
    %15 = vector.multi_reduction <add>, %14, %cst_12 [2] : vector<8x16x128xf32> to vector<8x16xf32>
    %16 = vector.shape_cast %15 : vector<8x16xf32> to vector<8x16x1xf32>
    %17 = tpu.reciprocal %16 : vector<8x16x1xf32> -> vector<8x16x1xf32>
    %18 = vector.broadcast %17 : vector<8x16x1xf32> to vector<8x16x128xf32>
    %19 = arith.mulf %14, %18 : vector<8x16x128xf32>
    %20 = arith.truncf %19 : vector<8x16x128xf32> to vector<8x16x128xbf16>
    "tpu.trace_start"() <{level = 10 : i32, message = "bqk,bkd->bqd"}> : () -> ()
    %cst_13 = arith.constant dense<0.000000e+00> : vector<8x16x32xf32>
    %21 = tpu.matmul %20, %2, %cst_13 {dimension_numbers = #tpu.dot_dimension_numbers<[2], [1], [1], [2], [0, 0, 0, 1, 1, 2], [0], [0]>} : vector<8x16x128xbf16>, vector<8x128x32xbf16>, vector<8x16x32xf32> -> vector<8x16x32xf32>
    "tpu.trace_stop"() : () -> ()
    %22 = arith.truncf %21 : vector<8x16x32xf32> to vector<8x16x32xbf16>
    %c0_14 = arith.constant 0 : index
    %c0_15 = arith.constant 0 : index
    %c0_16 = arith.constant 0 : index
    %23 = vector.load %arg5[%c0_14, %c0_15, %c0_16] : memref<8x16x32xbf16, #tpu.memory_space<vmem>>, vector<8x16x32xbf16>
    tpu.vector_store %arg5[%c0_14, %c0_15, %c0_16], %22 {strides = array<i32>} : memref<8x16x32xbf16, #tpu.memory_space<vmem>>, vector<8x16x32xbf16>,
    return
  }
  func.func @transform_0(%arg0: i32) -> (i32, i32, i32) {
    %c0_i32 = arith.constant 0 : i32
    %c0_i32_0 = arith.constant 0 : i32
    %c0_i32_1 = arith.constant 0 : i32
    return %arg0, %c0_i32, %c0_i32_0 : i32, i32, i32
  }
  func.func @transform_1(%arg0: i32) -> (i32, i32, i32) {
    %c0_i32 = arith.constant 0 : i32
    %c0_i32_0 = arith.constant 0 : i32
    %c0_i32_1 = arith.constant 0 : i32
    return %arg0, %c0_i32, %c0_i32_0 : i32, i32, i32
  }
  func.func @transform_2(%arg0: i32) -> (i32, i32, i32) {
    %c0_i32 = arith.constant 0 : i32
    %c0_i32_0 = arith.constant 0 : i32
    %c0_i32_1 = arith.constant 0 : i32
    return %arg0, %c0_i32, %c0_i32_0 : i32, i32, i32
  }
  func.func @transform_3(%arg0: i32) -> (i32, i32) {
    %c0_i32 = arith.constant 0 : i32
    %c0_i32_0 = arith.constant 0 : i32
    return %arg0, %c0_i32 : i32, i32
  }
  func.func @transform_4(%arg0: i32) -> (i32, i32, i32) {
    %c0_i32 = arith.constant 0 : i32
    %c0_i32_0 = arith.constant 0 : i32
    %c0_i32_1 = arith.constant 0 : i32
    return %arg0, %c0_i32, %c0_i32_0 : i32, i32, i32
  }
}

</mosaic_0001>

<bundles_post_ra>
// kernel: tpu_custom_call.1
= control target key start
LH: loop header
LB: loop body
LE: loop exit
PB: predicated region body
PF: predicated region fallthrough
CT: control target
= control target key end

     0   :  { %9 = vsyncpa [#allocation3], 0  ;;  %s3410_s0 = inlined_call_operand.vmem [shape: bf16[16,16,32], index: 0, kind: input, shape index: {}]   ;;  %s3411_s1 = inlined_call_operand.vmem [shape: bf16[16,32,128], index: 1, kind: input, shape index: {}]   ;;  %s3412_s2 = inlined_call_operand.vmem [shape: bf16[16,128,32], index: 2, kind: input, shape index: {}]   ;;  %s3413_s3 = inlined_call_operand.vmem [shape: f32[16,128], index: 3, kind: input, shape index: {}]   ;;  %s3414_s4 = inlined_call_operand.hbm [shape: bf16[16,16,32], index: 4, kind: output, shape index: {}]  }
   0x1   :  { %11 = vsyncpa [#allocation3 + $0x1], 0  ;;  %s2882_s15 = smov 0   ;;  %s2884_s16 = smov 0  }
   0x2   :  { %s2886_s17 = smov 0   ;;  %s2888_s18 = smov 0  }
   0x3 LB: > { %s2903_s19 = sadd.s32 4294967295, %s2849_s18   ;;  %s2116_s20 = sadd.s32 4294967294, %s2849_s18   ;;  %s2849_s18 = sphi %s2888_s18, %s3420_s18   ;;  %s2845_s17 = sphi %s2886_s17, %s3419_s17   ;;  %s2841_s16 = sphi %s2884_s16, %s3418_s16   ;;  %s2837_s15 = sphi %s2882_s15, %s3417_s15  }
   0x4   : > { %s2907_s21 = sadd.s32 1, %s2849_s18   ;;  %s128_s22 = sadd.s32 1, %s2845_s17 }
   0x5   : > { %s125_s23 = ssub.s32 %s2849_s18, %s2907_s21  ;;  %p138_p0 = scmp.ne.s32.totalorder %s2845_s17, %s2841_s16 }
   0x6   : > { %p126_p1 = scmp.eq.s32.totalorder %s125_s23, 0  ;;  %p139_p2 = scmp.eq.s32.totalorder %s2903_s19, 1 }
   0x7   : > { %p144_p3 = scmp.ne.s32.totalorder %s2841_s16, %s2837_s15  ;;  %p145_p4 = scmp.eq.s32.totalorder %s2116_s20, 1 }
   0x8   : > { %s2918_s24 = scalar_select %p126_p1, %s2845_s17, %s128_s22  }
   0x9   : > { %p2920_p5 = por %p139_p2, %p138_p0  ;;  %p2924_p6 = por %p145_p4, %p144_p3 }
   0xa   : > { %p2119_p7 = scmp.ge.s32.totalorder %s2849_s18, 1  ;;  %p200_p8 = scmp.lt.s32.totalorder %s2849_s18, 3 }
   0xc   : > { %p201_p9 = pnand %p2119_p7, %p200_p8 }
   0xd   : > { %s2121_s27 = sshll.u32 (!%p201_p9), %s2903_s19, 3  ;;  %v2851_v0 = vmov (!%p201_p9), 0.0   ;;  %vm2852_vm0 = vmmov (!%p201_p9), 0   ;;  %vm464_vm1 = vcmask (!%p201_p9), 261120   ;;  %p264_p11 = scmp.lt.s32.totalorder (!%p201_p9), %s2903_s19, 1  ;;  %v957_v27 = vlaneseq (!%p201_p9) }
   0xe   : > { %204 = sbr.rel (%p201_p9) target bundleno = 967 (0x3c7), region = 36  ;;  %2366 = vmatprep.subr.bf16.mxu0 (!%p201_p9), %v2851_v0  ;;  %2374 = vmatprep.subr.bf16.mxu1 (!%p201_p9), %v2851_v0  ;;  %p244_p10 = scmp.lt.s32.totalorder (!%p201_p9), %s2121_s27, 15  ;;  %v2853_v25 = vmov (!%p201_p9), 1966171168   ;;  %vm1986_vm2 = vcmask (!%p201_p9), 257024  }
   0xf   : > { %2370 = vmatprep.mubr.msk.bf16.mxu0 (!%p201_p9), %vm2852_vm0, %v2851_v0  ;;  %2378 = vmatprep.mubr.msk.bf16.mxu1 (!%p201_p9), %vm2852_vm0, %v2851_v0  ;;  %v955_v26 = vunpack.c.l.s4 (!%p201_p9), %v2853_v25  ;;  %v958_v29 = vshrl.u32 (!%p201_p9), %v957_v27, 7  ;;  %s2854_s11 = smov (!%p201_p9), [#allocation2]  }
  0x10   : > { %s2791_s12 = sshll.u32 (!%p201_p9), %s2854_s11, 4  ;;  %s2792_s12 = int_to_ptr.vmem [resolvable:$false] %s2791_s12 }
  0x11   : > { %v956_v28 = vunpack.c.0.s8 (!%p201_p9), %v955_v26  ;;  %v3026_v34 = vsub.s32 (!%p201_p9), 0, %v958_v29 }
  0x13   : > { %v959_v30 = vsub.s32 (!%p201_p9), %v956_v28, %v958_v29 }
  0x15   : > { %s3422_s27 = smov (!%p244_p10, %s2121_s27), 15 }
  0x16   : > { %s2250_s28 = sshll.u32 %s3422_s27, 4  ;;  %s2249_s6 = sshll.u32 %s3422_s27, 3 }
  0x17   : > { %s2943_s5 = scalar_lea.vmem %s3411_s1, %s2250_s28  ;;  %s2951_s9 = scalar_lea.vmem %s3410_s0, %s2249_s6 }
  0x18   : > { %v2634_v1 = vld [vmem:[%s2943_s5] sm:$0xff]   ;;  %v2635_v2 = vld [vmem:[%s2943_s5 + $0x10] sm:$0xff]   ;;  %v2636_v3 = vld [vmem:[%s2943_s5 + $0x8] sm:$0xff]   ;;  %s2251_s10 = sshll.u32 %s3422_s27, 6  ;;  %s240_s28 = sand.u32 1, %s2841_s16  }
  0x19   : > { %2367 = vmatpush3.bf16.msra.mxu0 %v2634_v1  ;;  %2375 = vmatpush3.bf16.msra.mxu1 %v2635_v2  ;;  %v2637_v4 = vld [vmem:[%s2943_s5 + $0x18] sm:$0xff]   ;;  %v2638_v5 = vld [vmem:[%s2951_s9] sm:$0xff]   ;;  %v2639_v6 = vld [vmem:[%s2951_s9 + $0x8] sm:$0xff]   ;;  %s2996_s13 = scalar_lea.vmem %s3412_s2, %s2251_s10  ;;  %s2120_s29 = sshll.u32 %s240_s28, 6 }
  0x1a   : > { %2368 = vmatprep.subr.bf16.mxu0 %v2851_v0  ;;  %2376 = vmatprep.subr.bf16.mxu1 %v2851_v0  ;;  %v2640_v7 = vld [vmem:[%s2943_s5 + $0x20] sm:$0xff]   ;;  %v2642_v8 = vld [vmem:[%s2943_s5 + $0x30] sm:$0xff]   ;;  %v2641_v9 = vld [vmem:[%s2943_s5 + $0x28] sm:$0xff]   ;;  %s265_s14 = scalar_select %p264_p11, %s2903_s19, 1 }
  0x1b   : > { %v2644_v10 = vld [vmem:[%s2943_s5 + $0x38] sm:$0xff]   ;;  %v2643_v11 = vld [vmem:[%s2951_s9 + $0x10] sm:$0xff]   ;;  %v2645_v12 = vld [vmem:[%s2943_s5 + $0x40] sm:$0xff]   ;;  %s3324_s30 = scalar_lea.vmem [#allocation2], %s2120_s29 }
  0x1c   : > { %v2646_v13 = vld [vmem:[%s2951_s9 + $0x18] sm:$0xff]   ;;  %v2648_v14 = vld [vmem:[%s2943_s5 + $0x50] sm:$0xff]   ;;  %v2647_v15 = vld [vmem:[%s2943_s5 + $0x48] sm:$0xff]   ;;  %s2130_s20 = sshll.u32 %s265_s14, 3  ;;  %s2018_s6 = sshll.u32 %s3324_s30, 4  ;;  %s3361_s6 = int_to_ptr.vmem [resolvable:$true] %s2018_s6 }
  0x1d   : > { %2369 = vmatpush3.bf16.msra.mxu0 %v2636_v3  ;;  %2377 = vmatpush3.bf16.msra.mxu1 %v2637_v4  ;;  %v2650_v16 = vld [vmem:[%s2943_s5 + $0x58] sm:$0xff]   ;;  %v2649_v17 = vld [vmem:[%s2951_s9 + $0x20] sm:$0xff]   ;;  %v2651_v18 = vld [vmem:[%s2951_s9 + $0x28] sm:$0xff]   ;;  %s267_s27 = scalar_lea.vmem %s3413_s3, %s2130_s20  ;;  %s2787_s10 = scalar_lea.vmem %s3361_s6, 1024 }
  0x1e   : > { %2382 = vmatprep.subr.bf16.mxu0 %v2851_v0  ;;  %2390 = vmatprep.subr.bf16.mxu1 %v2851_v0  ;;  %v2652_v19 = vld [vmem:[%s2943_s5 + $0x60] sm:$0xff]   ;;  %v2654_v20 = vld [vmem:[%s2943_s5 + $0x70] sm:$0xff]   ;;  %v2653_v21 = vld [vmem:[%s2943_s5 + $0x68] sm:$0xff]   ;;  %p2788_p12 = scmp.ne.s32.totalorder %s3361_s6, %s2787_s10  ;;  %p2794_p1 = scmp.lt.s32.totalorder %s3361_s6, %s2792_s12 }
  0x1f   : > { %v2656_v22 = vld [vmem:[%s2943_s5 + $0x78] sm:$0xff]   ;;  %v2655_v23 = vld [vmem:[%s2951_s9 + $0x30] sm:$0xff]   ;;  %v446_v31 = vld [vmem:[%s267_s27] sm:$0xff]  ;;  %s2269_s5 = sshll.u32 %s2903_s19, 10  ;;  %s3369_s19 = scalar_lea.sflag [#allocation3], %s240_s28 }
  0x20   : > { %2371 = vmatmul.mubr.msk.bf16.vlgmr.msra.gmra.mrb[0].mxu0 %vm464_vm1, %v2638_v5  ;;  %2379 = vmatmul.mubr.msk.bf16.vlgmr.msra.gmra.mrb[0].mxu1 %vm464_vm1, %v2639_v6  ;;  %v2657_v24 = vld [vmem:[%s2951_s9 + $0x38] sm:$0xff]   ;;  %v960_v32 = vrot.slane %v446_v31, %v959_v30  ;;  %v953_v51 = vcombine.high %v446_v31, %v446_v31  ;;  %s3359_s9 = scalar_lea.hbm %s3414_s4, %s2269_s5  ;;  %p2789_p13 = pnand %p2788_p12, %p2920_p5 }
  0x21   : > { %2383 = vmatpush3.bf16.msra.mxu0 %v2640_v7  ;;  %2391 = vmatpush3.bf16.msra.mxu1 %v2642_v8 }
  0x22   : > { %2384 = vmatprep.subr.bf16.mxu0 %v2851_v0  ;;  %2386 = vmatprep.mubr.msk.bf16.mxu0 %vm2852_vm0, %v2851_v0  ;;  %v968_v33 = vcombine.high %v960_v32, %v960_v32  ;;  %v976_v35 = vrot.slane %v960_v32, %v959_v30  ;;  %v967_v59 = vrot.slane %v953_v51, %v959_v30  ;;  %v2664_v51 = vld [vmem:[%s2996_s13 + $0x18] sm:$0xff]   ;;  %p2790_p0 = pneg %p2789_p13 }
  0x23   : > { %2392 = vmatprep.subr.bf16.mxu1 %v2851_v0  ;;  %2394 = vmatprep.mubr.msk.bf16.mxu1 %vm2852_vm0, %v2851_v0 }
  0x24   : > { %v990_v36 = vrot.slane %v968_v33, %v959_v30  ;;  %v1005_v37 = vrot.slane %v976_v35, %v3026_v34  ;;  %v998_v50 = vcombine.high %v976_v35, %v976_v35  ;;  %v969_v2 = vcombine.high %v967_v59, %v967_v59 }
  0x25   : > { %2385 = vmatpush3.bf16.msra.mxu0 %v2641_v9  ;;  %2393 = vmatpush3.bf16.msra.mxu1 %v2644_v10  ;;  %v3046_v10 = vrot.slane %v967_v59, %v959_v30 }
  0x26   : > { %2398 = vmatprep.subr.bf16.mxu0 %v2851_v0  ;;  %2406 = vmatprep.subr.bf16.mxu1 %v2851_v0  ;;  %v1009_v39 = vrot.slane %v990_v36, %v3026_v34  ;;  %v1000_v55 = vcombine.high %v990_v36, %v990_v36  ;;  %v1013_v58 = vrot.slane %v998_v50, %v3026_v34  ;;  %v2665_v50 = vld [vmem:[%s2996_s13 + $0x50] sm:$0xff]  }
  0x28   : > { %2387 = vmatmul.mubr.msk.bf16.vlgmr.msra.gmra.mrb[4].mxu0 %vm464_vm1, %v2643_v11  ;;  %2395 = vmatmul.mubr.msk.bf16.vlgmr.msra.gmra.mrb[4].mxu1 %vm464_vm1, %v2646_v13  ;;  %v1017_v1 = vrot.slane %v1000_v55, %v3026_v34 }
  0x29   : > { %2399 = vmatpush3.bf16.msra.mxu0 %v2645_v12  ;;  %2407 = vmatpush3.bf16.msra.mxu1 %v2648_v14 }
  0x2a   : > { %2400 = vmatprep.subr.bf16.mxu0 %v2851_v0  ;;  %2402 = vmatprep.mubr.msk.bf16.mxu0 %vm2852_vm0, %v2851_v0 }
  0x2b   : > { %2408 = vmatprep.subr.bf16.mxu1 %v2851_v0  ;;  %2410 = vmatprep.mubr.msk.bf16.mxu1 %vm2852_vm0, %v2851_v0 }
  0x2d   : > { %2401 = vmatpush3.bf16.msra.mxu0 %v2647_v15  ;;  %2409 = vmatpush3.bf16.msra.mxu1 %v2650_v16  ;;  %v3053_v15 = vrot.slane %v969_v2, %v959_v30 }
  0x2e   : > { %2414 = vmatprep.subr.bf16.mxu0 %v2851_v0  ;;  %2422 = vmatprep.subr.bf16.mxu1 %v2851_v0 }
  0x30   : > { %2403 = vmatmul.mubr.msk.bf16.vlgmr.msra.gmra.mrb[8].mxu0 %vm464_vm1, %v2649_v17  ;;  %2411 = vmatmul.mubr.msk.bf16.vlgmr.msra.gmra.mrb[8].mxu1 %vm464_vm1, %v2651_v18  ;;  %v1021_v17 = vrot.slane %v3046_v10, %v3026_v34 }
  0x31   : > { %2415 = vmatpush3.bf16.msra.mxu0 %v2652_v19  ;;  %2423 = vmatpush3.bf16.msra.mxu1 %v2654_v20 }
  0x32   : > { %2416 = vmatprep.subr.bf16.mxu0 %v2851_v0  ;;  %2418 = vmatprep.mubr.msk.bf16.mxu0 %vm2852_vm0, %v2851_v0 }
  0x33   : > { %2424 = vmatprep.subr.bf16.mxu1 %v2851_v0  ;;  %2426 = vmatprep.mubr.msk.bf16.mxu1 %vm2852_vm0, %v2851_v0 }
  0x35   : > { %2417 = vmatpush3.bf16.msra.mxu0 %v2653_v21  ;;  %2425 = vmatpush3.bf16.msra.mxu1 %v2656_v22  ;;  %v1025_v22 = vrot.slane %v3053_v15, %v3026_v34 }
  0x36   : > { %2430 = vmatprep.subr.bf16.mxu0 %v2851_v0  ;;  %2450 = vmatprep.subr.bf16.mxu1 %v2851_v0 }
  0x38   : > { %2419 = vmatmul.mubr.msk.bf16.vlgmr.msra.gmra.mrb[12].mxu0 %vm464_vm1, %v2655_v23  ;;  %2427 = vmatmul.mubr.msk.bf16.vlgmr.msra.gmra.mrb[12].mxu1 %vm464_vm1, %v2657_v24 }
  0x39   : > { %2446 = vmatprep.mubr.msk.bf16.mxu0 %vm2852_vm0, %v2851_v0  ;;  %2466 = vmatprep.mubr.msk.bf16.mxu1 %vm2852_vm0, %v2851_v0 }
  0xf3   : > { %v502_v38 = vpop.f32.mrb[0].mxu0  ;;  %v563_v41 = vpop.f32.mrb[0].mxu1 }
  0xf4   : > { %v936_v40 = vmul.f32 0.17677669, %v502_v38  ;;  %v2372_v42 = vpop.f32.mrb[1].mxu0  ;;  %v938_v43 = vmul.f32 0.17677669, %v563_v41  ;;  %v2380_v45 = vpop.f32.mrb[1].mxu1 }
  0xf5   : > { %v505_v44 = vpop.f32.mrb[2].mxu0  ;;  %v566_v48 = vpop.f32.mrb[2].mxu1  ;;  %v2661_v45 = vld [vmem:[%s2996_s13 + $0x40] sm:$0xff]  }
  0xf6   : > { %v937_v46 = vmul.f32 0.17677669, %v505_v44  ;;  %v2373_v47 = vpop.f32.mrb[3].mxu0  ;;  %v3030_v49 = vadd.f32 %v1005_v37, %v936_v40  ;;  %v939_v52 = vmul.f32 0.17677669, %v566_v48  ;;  %v2381_v53 = vpop.f32.mrb[3].mxu1  ;;  %v3032_v54 = vadd.f32 %v1009_v39, %v938_v43  ;;  %2451 = vmatpush3.bf16.msra.mxu1 %v2661_v45 }
  0xf7   : > { %v2659_v44 = vld [vmem:[%s2996_s13] sm:$0xff]   ;;  %v2663_v47 = vld [vmem:[%s2996_s13 + $0x48] sm:$0xff]   ;;  %2452 = vmatprep.subr.bf16.mxu1 %v2851_v0  ;;  %v2662_v48 = vld [vmem:[%s2996_s13 + $0x10] sm:$0xff]  }
  0xf8   : > { %1058 = vmax.xlane.f32.xlu0 %v3030_v49  ;;  %1062 = vmax.xlane.f32.xlu1 %v3032_v54  ;;  %v3036_v56 = vadd.f32 %v1009_v39, %v939_v52  ;;  %v3038_v57 = vadd.f32 %v1005_v37, %v937_v46  ;;  %v2660_v46 = vld [vmem:[%s2996_s13 + $0x8] sm:$0xff]  }
  0xf9   : > { %2431 = vmatpush3.bf16.msra.mxu0 %v2659_v44  ;;  %v2668_v45 = vld [vmem:[%s2996_s13 + $0x28] sm:$0xff]  }
  0xfa   : > { %2432 = vmatprep.subr.bf16.mxu0 %v2851_v0  ;;  %2453 = vmatpush3.bf16.msra.mxu1 %v2663_v47 }
  0xfb   : > { %v624_v60 = vpop.f32.mrb[4].mxu0  ;;  %v685_v63 = vpop.f32.mrb[4].mxu1  ;;  %2454 = vmatprep.subr.bf16.mxu1 %v2851_v0 }
  0xfc   : > { %v940_v61 = vmul.f32 0.17677669, %v624_v60  ;;  %1060 = vmax.xlane.f32.xlu0 %v3038_v57  ;;  %v2388_v62 = vpop.f32.mrb[5].mxu0  ;;  %1064 = vmax.xlane.f32.xlu1 %v3036_v56  ;;  %v942_v4 = vmul.f32 0.17677669, %v685_v63  ;;  %v2396_v5 = vpop.f32.mrb[5].mxu1 }
  0xfd   : > { %v627_v3 = vpop.f32.mrb[6].mxu0  ;;  %v688_v8 = vpop.f32.mrb[6].mxu1  ;;  %2433 = vmatpush3.bf16.msra.mxu0 %v2660_v46  ;;  %v2669_v46 = vld [vmem:[%s2996_s13 + $0x60] sm:$0xff]  }
  0xfe   : > { %v941_v6 = vmul.f32 0.17677669, %v627_v3  ;;  %v3044_v7 = vadd.f32 %v1013_v58, %v940_v61  ;;  %v2389_v9 = vpop.f32.mrb[7].mxu0  ;;  %v943_v11 = vmul.f32 0.17677669, %v688_v8  ;;  %v2397_v12 = vpop.f32.mrb[7].mxu1  ;;  %v3051_v14 = vadd.f32 %v1017_v1, %v942_v4  ;;  %2434 = vmatprep.subr.bf16.mxu0 %v2851_v0  ;;  %2455 = vmatpush3.bf16.msra.mxu1 %v2665_v50 }
  0xff   : > { %2456 = vmatprep.subr.bf16.mxu1 %v2851_v0  ;;  %v2670_v50 = vld [vmem:[%s2996_s13 + $0x30] sm:$0xff]  }
 0x100   : > { %1066 = vmax.xlane.f32.xlu0 %v3044_v7  ;;  %v3049_v13 = vadd.f32 %v1013_v58, %v941_v6  ;;  %v3056_v16 = vadd.f32 %v1017_v1, %v943_v11 }
 0x101   : > { %2435 = vmatpush3.bf16.msra.mxu0 %v2662_v48 }
 0x102   : > { %1068 = vmax.xlane.f32.xlu1 %v3049_v13  ;;  %2436 = vmatprep.subr.bf16.mxu0 %v2851_v0 }
 0x103   : > { %v746_v18 = vpop.f32.mrb[8].mxu0  ;;  %v807_v21 = vpop.f32.mrb[8].mxu1 }
 0x104   : > { %v944_v19 = vmul.f32 0.17677669, %v746_v18  ;;  %1070 = vmax.xlane.f32.xlu0 %v3051_v14  ;;  %v2404_v20 = vpop.f32.mrb[9].mxu0  ;;  %v946_v24 = vmul.f32 0.17677669, %v807_v21  ;;  %v2412_v25 = vpop.f32.mrb[9].mxu1 }
 0x105   : > { %v749_v23 = vpop.f32.mrb[10].mxu0  ;;  %v810_v28 = vpop.f32.mrb[10].mxu1  ;;  %2437 = vmatpush3.bf16.msra.mxu0 %v2664_v51  ;;  %v2671_v51 = vld [vmem:[%s2996_s13 + $0x68] sm:$0xff]  }
 0x106   : > { %v945_v26 = vmul.f32 0.17677669, %v749_v23  ;;  %1072 = vmax.xlane.f32.xlu1 %v3056_v16  ;;  %v3064_v27 = vadd.f32 %v1021_v17, %v944_v19  ;;  %v2405_v29 = vpop.f32.mrb[11].mxu0  ;;  %v947_v30 = vmul.f32 0.17677669, %v810_v28  ;;  %v2413_v31 = vpop.f32.mrb[11].mxu1  ;;  %v3069_v33 = vadd.f32 %v1025_v22, %v946_v24  ;;  %2438 = vmatprep.subr.bf16.mxu0 %v2851_v0 }
 0x108   : > { %1074 = vmax.xlane.f32.xlu0 %v3064_v27  ;;  %v3067_v32 = vadd.f32 %v1021_v17, %v945_v26  ;;  %v3072_v35 = vadd.f32 %v1025_v22, %v947_v30  ;;  %v1001_v17 = vcombine.high %v3053_v15, %v3053_v15 }
 0x10a   : > { %1076 = vmax.xlane.f32.xlu1 %v3067_v32  ;;  %v1033_v15 = vrot.slane %v1001_v17, %v3026_v34 }
 0x10b   : > { %v868_v36 = vpop.f32.mrb[12].mxu0  ;;  %v3078_v40 = vpop.f32.mrb[12].mxu1 }
 0x10c   : > { %1078 = vmax.xlane.f32.xlu0 %v3069_v33  ;;  %v2420_v37 = vpop.f32.mrb[13].mxu0  ;;  %v2428_v41 = vpop.f32.mrb[13].mxu1  ;;  %v948_v11 = vmul.f32 0.17677669, %v868_v36 }
 0x10d   : > { %v3076_v38 = vpop.f32.mrb[14].mxu0  ;;  %v3080_v42 = vpop.f32.mrb[14].mxu1  ;;  %v2667_v41 = vld [vmem:[%s2996_s13 + $0x58] sm:$0xff]  }
 0x10e   : > { %1080 = vmax.xlane.f32.xlu1 %v3072_v35  ;;  %v2421_v39 = vpop.f32.mrb[15].mxu0  ;;  %v2429_v43 = vpop.f32.mrb[15].mxu1  ;;  %v949_v26 = vmul.f32 0.17677669, %v3076_v38  ;;  %v951_v36 = vmul.f32 0.17677669, %v3080_v42  ;;  %2457 = vmatpush3.bf16.msra.mxu1 %v2667_v41 }
 0x10f   : > { %2458 = vmatprep.subr.bf16.mxu1 %v2851_v0  ;;  %v2686_v41 = vld [vmem:[%s2996_s13 + $0xb0] sm:$0xff]  }
 0x112   : > { %2459 = vmatpush3.bf16.msra.mxu1 %v2669_v46 }
 0x113   : > { %2460 = vmatprep.subr.bf16.mxu1 %v2851_v0 }
 0x116   : > { %2461 = vmatpush3.bf16.msra.mxu1 %v2671_v51 }
 0x117   : > { %2462 = vmatprep.subr.bf16.mxu1 %v2851_v0 }
 0x185   : > { %v1059_v52 = vpop.xlane.xlu0 %1058  ;;  %v1063_v53 = vpop.xlane.xlu1 %1062 }
 0x186   : > { %v1090_v55 = vsub.f32 %v3030_v49, %v1059_v52  ;;  %v1092_v58 = vsub.f32 %v3032_v54, %v1063_v53  ;;  %v999_v49 = vcombine.high %v3046_v10, %v3046_v10 }
 0x188   : > { %v1106_v59 = vmul.f32 1.442695, %v1090_v55  ;;  %v1110_v60 = vmul.f32 1.442695, %v1092_v58  ;;  %v2672_v55 = vld [vmem:[%s2996_s13 + $0x38] sm:$0xff]   ;;  %v2673_v58 = vld [vmem:[%s2996_s13 + $0x70] sm:$0xff]  }
 0x189   : > { %v1061_v61 = vpop.xlane.xlu0 %1060  ;;  %v1065_v62 = vpop.xlane.xlu1 %1064  ;;  %2463 = vmatpush3.bf16.msra.mxu1 %v2673_v58 }
 0x18a   : > { %2723 = vpow2.f32 %v1106_v59  ;;  %v1091_v63 = vsub.f32 %v3038_v57, %v1061_v61  ;;  %v1093_v1 = vsub.f32 %v3036_v56, %v1065_v62  ;;  %v1029_v57 = vrot.slane %v999_v49, %v3026_v34  ;;  %2464 = vmatprep.subr.bf16.mxu1 %v2851_v0 }
 0x18b   : > { %2725 = vpow2.f32 %v1110_v60  ;;  %v2674_v60 = vld [vmem:[%s2996_s13 + $0x78] sm:$0xff]  }
 0x18c   : > { %v1108_v2 = vmul.f32 1.442695, %v1091_v63  ;;  %v1112_v4 = vmul.f32 1.442695, %v1093_v1  ;;  %v3115_v20 = vadd.f32 %v1029_v57, %v948_v11  ;;  %v3133_v37 = vadd.f32 %v1029_v57, %v949_v26  ;;  %v2676_v26 = vld [vmem:[%s2996_s13 + $0x88] sm:$0xff]  }
 0x18d   : > { %v1067_v3 = vpop.xlane.xlu0 %1066  ;;  %2465 = vmatpush3.bf16.msra.mxu1 %v2674_v60 }
 0x18e   : > { %2727 = vpow2.f32 %v1108_v2  ;;  %v1094_v54 = vsub.f32 %v3044_v7, %v1067_v3  ;;  %2490 = vmatprep.subr.bf16.mxu1 %v2851_v0 }
 0x18f   : > { %v1069_v5 = vpop.xlane.xlu1 %1068  ;;  %2729 = vpow2.f32 %v1112_v4 }
 0x190   : > { %v1095_v56 = vsub.f32 %v3049_v13, %v1069_v5  ;;  %v1114_v18 = vmul.f32 1.442695, %v1094_v54  ;;  %v950_v13 = vmul.f32 0.17677669, %v3078_v40  ;;  %v3138_v40 = vadd.f32 %v1033_v15, %v951_v36  ;;  %v2683_v36 = vld [vmem:[%s2996_s13 + $0xd8] sm:$0xff]  }
 0x191   : > { %v1071_v6 = vpop.xlane.xlu0 %1070 }
 0x192   : > { %v1096_v10 = vsub.f32 %v3051_v14, %v1071_v6  ;;  %v1116_v21 = vmul.f32 1.442695, %v1095_v56  ;;  %2731 = vpow2.f32 %v1114_v18  ;;  %v3129_v30 = vadd.f32 %v1033_v15, %v950_v13 }
 0x193   : > { %v1073_v8 = vpop.xlane.xlu1 %1072 }
 0x194   : > { %v3103_v9 = vpop.eup %2723  ;;  %v1097_v22 = vsub.f32 %v3056_v16, %v1073_v8  ;;  %v1118_v14 = vmul.f32 1.442695, %v1096_v10  ;;  %2733 = vpow2.f32 %v1116_v21  ;;  %v2675_v21 = vld [vmem:[%s2996_s13 + $0x80] sm:$0xff]  }
 0x195   : > { %1138 = vadd.xlane.f32.xlu0 %v3103_v9  ;;  %v1075_v12 = vpop.xlane.xlu0 %1074  ;;  %v3111_v19 = vpop.eup %2725 }
 0x196   : > { %v1098_v24 = vsub.f32 %v3064_v27, %v1075_v12  ;;  %v1120_v16 = vmul.f32 1.442695, %v1097_v22  ;;  %2735 = vpow2.f32 %v1118_v14 }
 0x197   : > { %v1077_v23 = vpop.xlane.xlu1 %1076 }
 0x198   : > { %v3113_v7 = vpop.eup %2727  ;;  %v1099_v29 = vsub.f32 %v3067_v32, %v1077_v23  ;;  %v1122_v34 = vmul.f32 1.442695, %v1098_v24  ;;  %2737 = vpow2.f32 %v1120_v16  ;;  %v2677_v24 = vld [vmem:[%s2996_s13 + $0xc0] sm:$0xff]  }
 0x199   : > { %1142 = vadd.xlane.f32.xlu0 %v3111_v19  ;;  %1140 = vadd.xlane.f32.xlu1 %v3113_v7  ;;  %v1079_v25 = vpop.xlane.xlu0 %1078  ;;  %v3124_v28 = vpop.eup %2729 }
 0x19a   : > { %v1100_v27 = vsub.f32 %v3069_v33, %v1079_v25  ;;  %v1124_v38 = vmul.f32 1.442695, %v1099_v29  ;;  %2739 = vpow2.f32 %v1122_v34  ;;  %v2666_v33 = vld [vmem:[%s2996_s13 + $0x20] sm:$0xff]  }
 0x19b   : > { %v1081_v31 = vpop.xlane.xlu1 %1080  ;;  %2439 = vmatpush3.bf16.msra.mxu0 %v2666_v33  ;;  %v2687_v33 = vld [vmem:[%s2996_s13 + $0xe8] sm:$0xff]  }
 0x19c   : > { %v1126_v32 = vmul.f32 1.442695, %v1100_v27  ;;  %v1101_v39 = vsub.f32 %v3072_v35, %v1081_v31  ;;  %v3142_v43 = vpop.eup %2731  ;;  %2741 = vpow2.f32 %v1124_v38  ;;  %2440 = vmatprep.subr.bf16.mxu0 %v2851_v0  ;;  %v2680_v27 = vld [vmem:[%s2996_s13 + $0x98] sm:$0xff]   ;;  %v2682_v38 = vld [vmem:[%s2996_s13 + $0xa0] sm:$0xff]  }
 0x19d   : > { %1144 = vadd.xlane.f32.xlu1 %v3124_v28  ;;  %1082 = vmax.xlane.f32.xlu0 %v3115_v20 }
 0x19e   : > { %2743 = vpow2.f32 %v1126_v32  ;;  %v1128_v42 = vmul.f32 1.442695, %v1101_v39  ;;  %v3146_v44 = vpop.eup %2733  ;;  %v2685_v39 = vld [vmem:[%s2996_s13 + $0xe0] sm:$0xff]  }
 0x19f   : > { %2441 = vmatpush3.bf16.msra.mxu0 %v2668_v45  ;;  %v2689_v45 = vld [vmem:[%s2996_s13 + $0xf0] sm:$0xff]  }
 0x1a0   : > { %v3150_v35 = vpop.eup %2735  ;;  %2745 = vpow2.f32 %v1128_v42  ;;  %2442 = vmatprep.subr.bf16.mxu0 %v2851_v0 }
 0x1a1   : > { %1086 = vmax.xlane.f32.xlu0 %v3129_v30  ;;  %1084 = vmax.xlane.f32.xlu1 %v3133_v37 }
 0x1a2   : > { %v3156_v47 = vpop.eup %2737 }
 0x1a3   : > { %2443 = vmatpush3.bf16.msra.mxu0 %v2670_v50  ;;  %v2688_v50 = vld [vmem:[%s2996_s13 + $0xb8] sm:$0xff]  }
 0x1a4   : > { %v3160_v48 = vpop.eup %2739  ;;  %2444 = vmatprep.subr.bf16.mxu0 %v2851_v0 }
 0x1a5   : > { %1146 = vadd.xlane.f32.xlu0 %v3142_v43  ;;  %1088 = vmax.xlane.f32.xlu1 %v3138_v40 }
 0x1a6   : > { %v3166_v52 = vpop.eup %2741 }
 0x1a7   : > { %2445 = vmatpush3.bf16.msra.mxu0 %v2672_v55 }
 0x1a8   : > { %v3168_v53 = vpop.eup %2743  ;;  %2470 = vmatprep.subr.bf16.mxu0 %v2851_v0 }
 0x1a9   : > { %1150 = vadd.xlane.f32.xlu0 %v3150_v35  ;;  %1148 = vadd.xlane.f32.xlu1 %v3146_v44 }
 0x1aa   : > { %v3176_v59 = vpop.eup %2745 }
 0x1ad   : > { %1154 = vadd.xlane.f32.xlu0 %v3160_v48  ;;  %1152 = vadd.xlane.f32.xlu1 %v3156_v47 }
 0x1b1   : > { %1158 = vadd.xlane.f32.xlu0 %v3168_v53  ;;  %1156 = vadd.xlane.f32.xlu1 %v3166_v52 }
 0x1b5   : > { %1160 = vadd.xlane.f32.xlu1 %v3176_v59 }
 0x222   : > { %v1139_v61 = vpop.xlane.xlu0 %1138 }
 0x223   : > { %2747 = vrcp.f32 %v1139_v61  ;;  %v2690_v61 = vld [vmem:[%s2996_s13 + $0xf8] sm:$0xff]  }
 0x226   : > { %v1143_v62 = vpop.xlane.xlu0 %1142  ;;  %v1141_v63 = vpop.xlane.xlu1 %1140 }
 0x227   : > { %2749 = vrcp.f32 %v1141_v63 }
 0x228   : > { %2751 = vrcp.f32 %v1143_v62  ;;  %v2691_v62 = vld [vmem:[%s2996_s13 + $0x100] sm:$0xff]  }
 0x22a   : > { %v1145_v1 = vpop.xlane.xlu1 %1144  ;;  %v1083_v2 = vpop.xlane.xlu0 %1082 }
 0x22b   : > { %2753 = vrcp.f32 %v1145_v1  ;;  %v1102_v3 = vsub.f32 %v3115_v20, %v1083_v2 }
 0x22d   : > { %v1130_v4 = vmul.f32 1.442695, %v1102_v3  ;;  %v2748_v8 = vpop.eup %2747  ;;  %v2692_v3 = vld [vmem:[%s2996_s13 + $0x108] sm:$0xff]  }
 0x22e   : > { %v1087_v5 = vpop.xlane.xlu0 %1086  ;;  %v1085_v49 = vpop.xlane.xlu1 %1084  ;;  %v1186_v10 = vmul.f32 %v2748_v8, %v3103_v9 }
 0x22f   : > { %2755 = vpow2.f32 %v1130_v4  ;;  %v1104_v6 = vsub.f32 %v3129_v30, %v1087_v5  ;;  %v1103_v54 = vsub.f32 %v3133_v37, %v1085_v49  ;;  %v2681_v30 = vld [vmem:[%s2996_s13 + $0xd0] sm:$0xff]  }
 0x230   : > { %v2697_v5 = vld [vmem:[%s2996_s13 + $0x150] sm:$0xff]  }
 0x231   : > { %v1134_v11 = vmul.f32 1.442695, %v1104_v6  ;;  %v1132_v57 = vmul.f32 1.442695, %v1103_v54  ;;  %v2750_v56 = vpop.eup %2749  ;;  %v2696_v6 = vld [vmem:[%s2996_s13 + $0x118] sm:$0xff]  }
 0x232   : > { %v1089_v12 = vpop.xlane.xlu1 %1088  ;;  %v2752_v17 = vpop.eup %2751  ;;  %v1187_v20 = vmul.f32 %v2750_v56, %v3113_v7  ;;  %v2678_v7 = vld [vmem:[%s2996_s13 + $0x90] sm:$0xff]   ;;  %v2699_v54 = vld [vmem:[%s2996_s13 + $0x158] sm:$0xff]   ;;  %v2701_v56 = vld [vmem:[%s2996_s13 + $0x160] sm:$0xff]  }
 0x233   : > { %2757 = vpow2.f32 %v1134_v11  ;;  %v1105_v18 = vsub.f32 %v3138_v40, %v1089_v12  ;;  %v1188_v15 = vmul.f32 %v2752_v17, %v3111_v19  ;;  %v2679_v19 = vld [vmem:[%s2996_s13 + $0xc8] sm:$0xff]   ;;  %v1147_v34 = vpop.xlane.xlu0 %1146  ;;  %v2698_v11 = vld [vmem:[%s2996_s13 + $0x120] sm:$0xff]  }
 0x234   : > { %2759 = vpow2.f32 %v1132_v57  ;;  %v1202_v13 = vpack.c.bf16 %v1187_v20, %v1186_v10  ;;  %v2684_v40 = vld [vmem:[%s2996_s13 + $0xa8] sm:$0xff]   ;;  %v2705_v20 = vld [vmem:[%s2996_s13 + $0x170] sm:$0xff]  }
 0x235   : > { %v2754_v22 = vpop.eup %2753  ;;  %v1136_v23 = vmul.f32 1.442695, %v1105_v18  ;;  %v2700_v12 = vld [vmem:[%s2996_s13 + $0x128] sm:$0xff]   ;;  %v2702_v18 = vld [vmem:[%s2996_s13 + $0x130] sm:$0xff]  }
 0x236   : > { %v1189_v14 = vmul.f32 %v2754_v22, %v3124_v28  ;;  %2447 = vmatmul.mubr.bf16.vlgmr.msra.gmra.mrb[16].mxu0 %v1202_v13  ;;  %v1149_v29 = vpop.xlane.xlu1 %1148  ;;  %v2703_v17 = vld [vmem:[%s2996_s13 + $0x168] sm:$0xff]   ;;  %v2704_v22 = vld [vmem:[%s2996_s13 + $0x138] sm:$0xff]  }
 0x237   : > { %2761 = vpow2.f32 %v1136_v23  ;;  %2471 = vmatpush3.bf16.msra.mxu0 %v2675_v21  ;;  %2486 = vmatprep.mubr.msk.bf16.mxu0 %vm2852_vm0, %v2851_v0  ;;  %v1151_v32 = vpop.xlane.xlu0 %1150 }
 0x238   : > { %v1203_v25 = vpack.c.bf16 %v1189_v14, %v1188_v15  ;;  %2472 = vmatprep.subr.bf16.mxu0 %v2851_v0  ;;  %2763 = vrcp.f32 %v1149_v29 }
 0x239   : > { %v3196_v9 = vpop.eup %2755  ;;  %2765 = vrcp.f32 %v1147_v34  ;;  %v2712_v34 = vld [vmem:[%s2996_s13 + $0x198] sm:$0xff]  }
 0x23a   : > { %2467 = vmatmul.mubr.bf16.vlgmr.msra.gmra.mrb[16].mxu1 %v1203_v25  ;;  %1162 = vadd.xlane.f32.xlu0 %v3196_v9  ;;  %v1153_v37 = vpop.xlane.xlu1 %1152 }
 0x23b   : > { %2491 = vmatpush3.bf16.msra.mxu1 %v2677_v24  ;;  %2506 = vmatprep.mubr.msk.bf16.mxu1 %vm2852_vm0, %v2851_v0  ;;  %2767 = vrcp.f32 %v1153_v37  ;;  %v1155_v49 = vpop.xlane.xlu0 %1154  ;;  %v2706_v24 = vld [vmem:[%s2996_s13 + $0x178] sm:$0xff]   ;;  %v2717_v37 = vld [vmem:[%s2996_s13 + $0x1e0] sm:$0xff]  }
 0x23c   : > { %2473 = vmatpush3.bf16.msra.mxu0 %v2676_v26  ;;  %2492 = vmatprep.subr.bf16.mxu1 %v2851_v0  ;;  %2769 = vrcp.f32 %v1151_v32  ;;  %v2707_v26 = vld [vmem:[%s2996_s13 + $0x180] sm:$0xff]   ;;  %v2719_v32 = vld [vmem:[%s2996_s13 + $0x1e8] sm:$0xff]  }
 0x23d   : > { %v3205_v28 = vpop.eup %2757  ;;  %2474 = vmatprep.subr.bf16.mxu0 %v2851_v0 }
 0x23e   : > { %v3208_v16 = vpop.eup %2759  ;;  %1166 = vadd.xlane.f32.xlu0 %v3205_v28  ;;  %v1157_v4 = vpop.xlane.xlu1 %1156 }
 0x23f   : > { %2493 = vmatpush3.bf16.msra.mxu1 %v2679_v19  ;;  %1164 = vadd.xlane.f32.xlu1 %v3208_v16  ;;  %2771 = vrcp.f32 %v1157_v4  ;;  %v1159_v57 = vpop.xlane.xlu0 %1158 }
 0x240   : > { %2475 = vmatpush3.bf16.msra.mxu0 %v2678_v7  ;;  %2494 = vmatprep.subr.bf16.mxu1 %v2851_v0  ;;  %2773 = vrcp.f32 %v1155_v49 }
 0x241   : > { %v3215_v31 = vpop.eup %2761  ;;  %2476 = vmatprep.subr.bf16.mxu0 %v2851_v0 }
 0x242   : > { %v2764_v42 = vpop.eup %2763  ;;  %v1161_v8 = vpop.xlane.xlu1 %1160 }
 0x243   : > { %2495 = vmatpush3.bf16.msra.mxu1 %v2681_v30  ;;  %1168 = vadd.xlane.f32.xlu1 %v3215_v31  ;;  %v2766_v46 = vpop.eup %2765  ;;  %v1191_v55 = vmul.f32 %v2764_v42, %v3146_v44  ;;  %v2693_v44 = vld [vmem:[%s2996_s13 + $0x140] sm:$0xff]   ;;  %2775 = vrcp.f32 %v1161_v8  ;;  %v2713_v30 = vld [vmem:[%s2996_s13 + $0x1d0] sm:$0xff]  }
 0x244   : > { %2477 = vmatpush3.bf16.msra.mxu0 %v2680_v27  ;;  %2496 = vmatprep.subr.bf16.mxu1 %v2851_v0  ;;  %v1190_v60 = vmul.f32 %v2766_v46, %v3142_v43  ;;  %2777 = vrcp.f32 %v1159_v57  ;;  %v2715_v27 = vld [vmem:[%s2996_s13 + $0x1d8] sm:$0xff]  }
 0x245   : > { %2478 = vmatprep.subr.bf16.mxu0 %v2851_v0  ;;  %v2768_v51 = vpop.eup %2767 }
 0x246   : > { %v2770_v58 = vpop.eup %2769  ;;  %v1193_v63 = vmul.f32 %v2768_v51, %v3156_v47  ;;  %v1204_v1 = vpack.c.bf16 %v1191_v55, %v1190_v60  ;;  %v2694_v47 = vld [vmem:[%s2996_s13 + $0x110] sm:$0xff]  }
 0x247   : > { %2497 = vmatpush3.bf16.msra.mxu1 %v2683_v36  ;;  %v1192_v2 = vmul.f32 %v2770_v58, %v3150_v35  ;;  %v2695_v35 = vld [vmem:[%s2996_s13 + $0x148] sm:$0xff]   ;;  %v2714_v36 = vld [vmem:[%s2996_s13 + $0x1a0] sm:$0xff]  }
 0x248   : > { %2479 = vmatpush3.bf16.msra.mxu0 %v2682_v38  ;;  %2498 = vmatprep.subr.bf16.mxu1 %v2851_v0  ;;  %v2716_v38 = vld [vmem:[%s2996_s13 + $0x1a8] sm:$0xff]  }
 0x249   : > { %2480 = vmatprep.subr.bf16.mxu0 %v2851_v0  ;;  %v1205_v43 = vpack.c.bf16 %v1193_v63, %v1192_v2  ;;  %v2772_v10 = vpop.eup %2771 }
 0x24a   : > { %v2774_v21 = vpop.eup %2773  ;;  %v1195_v13 = vmul.f32 %v2772_v10, %v3166_v52  ;;  %v2709_v52 = vld [vmem:[%s2996_s13 + $0x1c0] sm:$0xff]  }
 0x24b   : > { %2499 = vmatpush3.bf16.msra.mxu1 %v2685_v39  ;;  %v1194_v14 = vmul.f32 %v2774_v21, %v3160_v48  ;;  %v2708_v48 = vld [vmem:[%s2996_s13 + $0x188] sm:$0xff]   ;;  %v2718_v39 = vld [vmem:[%s2996_s13 + $0x1b0] sm:$0xff]  }
 0x24c   : > { %2481 = vmatpush3.bf16.msra.mxu0 %v2684_v40  ;;  %2500 = vmatprep.subr.bf16.mxu1 %v2851_v0  ;;  %v2721_v40 = vld [vmem:[%s2996_s13 + $0x1f0] sm:$0xff]  }
 0x24d   : > { %2482 = vmatprep.subr.bf16.mxu0 %v2851_v0  ;;  %v2776_v23 = vpop.eup %2775  ;;  %v1206_v19 = vpack.c.bf16 %v1195_v13, %v1194_v14 }
 0x24e   : > { %v2778_v15 = vpop.eup %2777  ;;  %v1197_v25 = vmul.f32 %v2776_v23, %v3176_v59  ;;  %v2710_v59 = vld [vmem:[%s2996_s13 + $0x190] sm:$0xff]  }
 0x24f   : > { %2501 = vmatpush3.bf16.msra.mxu1 %v2687_v33  ;;  %v1196_v7 = vmul.f32 %v2778_v15, %v3168_v53  ;;  %v2711_v53 = vld [vmem:[%s2996_s13 + $0x1c8] sm:$0xff]   ;;  %v2720_v33 = vld [vmem:[%s2996_s13 + $0x1b8] sm:$0xff]  }
 0x250   : > { %2483 = vmatpush3.bf16.msra.mxu0 %v2686_v41  ;;  %2502 = vmatprep.subr.bf16.mxu1 %v2851_v0  ;;  %v2722_v41 = vld [vmem:[%s2996_s13 + $0x1f8] sm:$0xff]   ;;  %s2793_s13 = scalar_lea.vmem %s2792_s12, 2048 }
 0x251   : > { %2484 = vmatprep.subr.bf16.mxu0 %v2851_v0  ;;  %v1207_v29 = vpack.c.bf16 %v1197_v25, %v1196_v7  ;;  %p2795_p2 = scmp.lt.s32.totalorder %s2793_s13, %s2787_s10 }
 0x253   : > { %2503 = vmatpush3.bf16.msra.mxu1 %v2689_v45  ;;  %p2796_p3 = por %p2795_p2, %p2794_p1 }
 0x254   : > { %2485 = vmatpush3.bf16.msra.mxu0 %v2688_v50  ;;  %2504 = vmatprep.subr.bf16.mxu1 %v2851_v0 }
 0x255   : > { %2510 = vmatprep.subr.bf16.mxu0 %v2851_v0  ;;  %p2797_p4 = pnand %p2796_p3, %p2790_p0 }
 0x257   : > { %2487 = vmatmul.mubr.bf16.vlgmr.msra.gmra.mrb[20].mxu0 %v1204_v1  ;;  %2505 = vmatpush3.bf16.msra.mxu1 %v2690_v61 }
 0x258   : > { %2511 = vmatpush3.bf16.msra.mxu0 %v2691_v62  ;;  %2530 = vmatprep.subr.bf16.mxu1 %v2851_v0 }
 0x259   : > { %2512 = vmatprep.subr.bf16.mxu0 %v2851_v0  ;;  %2526 = vmatprep.mubr.msk.bf16.mxu0 %vm2852_vm0, %v2851_v0 }
 0x25a   : > { %2507 = vmatmul.mubr.bf16.vlgmr.msra.gmra.mrb[20].mxu1 %v1205_v43 }
 0x25b   : > { %2531 = vmatpush3.bf16.msra.mxu1 %v2693_v44  ;;  %2546 = vmatprep.mubr.msk.bf16.mxu1 %vm2852_vm0, %v2851_v0 }
 0x25c   : > { %2513 = vmatpush3.bf16.msra.mxu0 %v2692_v3  ;;  %2532 = vmatprep.subr.bf16.mxu1 %v2851_v0 }
 0x25d   : > { %2514 = vmatprep.subr.bf16.mxu0 %v2851_v0 }
 0x25f   : > { %2533 = vmatpush3.bf16.msra.mxu1 %v2695_v35 }
 0x260   : > { %2515 = vmatpush3.bf16.msra.mxu0 %v2694_v47  ;;  %2534 = vmatprep.subr.bf16.mxu1 %v2851_v0 }
 0x261   : > { %2516 = vmatprep.subr.bf16.mxu0 %v2851_v0 }
 0x263   : > { %2535 = vmatpush3.bf16.msra.mxu1 %v2697_v5 }
 0x264   : > { %2517 = vmatpush3.bf16.msra.mxu0 %v2696_v6  ;;  %2536 = vmatprep.subr.bf16.mxu1 %v2851_v0 }
 0x265   : > { %2518 = vmatprep.subr.bf16.mxu0 %v2851_v0 }
 0x267   : > { %2537 = vmatpush3.bf16.msra.mxu1 %v2699_v54 }
 0x268   : > { %2519 = vmatpush3.bf16.msra.mxu0 %v2698_v11  ;;  %2538 = vmatprep.subr.bf16.mxu1 %v2851_v0 }
 0x269   : > { %2520 = vmatprep.subr.bf16.mxu0 %v2851_v0 }
 0x26b   : > { %2539 = vmatpush3.bf16.msra.mxu1 %v2701_v56 }
 0x26c   : > { %2521 = vmatpush3.bf16.msra.mxu0 %v2700_v12  ;;  %2540 = vmatprep.subr.bf16.mxu1 %v2851_v0 }
 0x26d   : > { %2522 = vmatprep.subr.bf16.mxu0 %v2851_v0 }
 0x26f   : > { %2541 = vmatpush3.bf16.msra.mxu1 %v2703_v17 }
 0x270   : > { %2523 = vmatpush3.bf16.msra.mxu0 %v2702_v18  ;;  %2542 = vmatprep.subr.bf16.mxu1 %v2851_v0 }
 0x271   : > { %2524 = vmatprep.subr.bf16.mxu0 %v2851_v0 }
 0x273   : > { %2543 = vmatpush3.bf16.msra.mxu1 %v2705_v20 }
 0x274   : > { %2525 = vmatpush3.bf16.msra.mxu0 %v2704_v22  ;;  %2544 = vmatprep.subr.bf16.mxu1 %v2851_v0 }
 0x275   : > { %2550 = vmatprep.subr.bf16.mxu0 %v2851_v0 }
 0x277   : > { %2527 = vmatmul.mubr.bf16.vlgmr.msra.gmra.mrb[24].mxu0 %v1206_v19  ;;  %2545 = vmatpush3.bf16.msra.mxu1 %v2706_v24 }
 0x278   : > { %2551 = vmatpush3.bf16.msra.mxu0 %v2707_v26  ;;  %2570 = vmatprep.subr.bf16.mxu1 %v2851_v0 }
 0x279   : > { %2552 = vmatprep.subr.bf16.mxu0 %v2851_v0  ;;  %2566 = vmatprep.mubr.msk.bf16.mxu0 %vm2852_vm0, %v2851_v0 }
 0x27a   : > { %2547 = vmatmul.mubr.bf16.vlgmr.msra.gmra.mrb[24].mxu1 %v1207_v29 }
 0x27b   : > { %2571 = vmatpush3.bf16.msra.mxu1 %v2709_v52  ;;  %2586 = vmatprep.mubr.msk.bf16.mxu1 %vm2852_vm0, %v2851_v0 }
 0x27c   : > { %2553 = vmatpush3.bf16.msra.mxu0 %v2708_v48  ;;  %2572 = vmatprep.subr.bf16.mxu1 %v2851_v0 }
 0x27d   : > { %2554 = vmatprep.subr.bf16.mxu0 %v2851_v0 }
 0x27f   : > { %2573 = vmatpush3.bf16.msra.mxu1 %v2711_v53 }
 0x280   : > { %2555 = vmatpush3.bf16.msra.mxu0 %v2710_v59  ;;  %2574 = vmatprep.subr.bf16.mxu1 %v2851_v0 }
 0x281   : > { %2556 = vmatprep.subr.bf16.mxu0 %v2851_v0 }
 0x283   : > { %2575 = vmatpush3.bf16.msra.mxu1 %v2713_v30 }
 0x284   : > { %2557 = vmatpush3.bf16.msra.mxu0 %v2712_v34  ;;  %2576 = vmatprep.subr.bf16.mxu1 %v2851_v0 }
 0x285   : > { %2558 = vmatprep.subr.bf16.mxu0 %v2851_v0 }
 0x287   : > { %2577 = vmatpush3.bf16.msra.mxu1 %v2715_v27 }
 0x288   : > { %2559 = vmatpush3.bf16.msra.mxu0 %v2714_v36  ;;  %2578 = vmatprep.subr.bf16.mxu1 %v2851_v0 }
 0x289   : > { %2560 = vmatprep.subr.bf16.mxu0 %v2851_v0 }
 0x28b   : > { %2579 = vmatpush3.bf16.msra.mxu1 %v2717_v37 }
 0x28c   : > { %2561 = vmatpush3.bf16.msra.mxu0 %v2716_v38  ;;  %2580 = vmatprep.subr.bf16.mxu1 %v2851_v0 }
 0x28d   : > { %2562 = vmatprep.subr.bf16.mxu0 %v2851_v0 }
 0x28f   : > { %2581 = vmatpush3.bf16.msra.mxu1 %v2719_v32 }
 0x290   : > { %2563 = vmatpush3.bf16.msra.mxu0 %v2718_v39  ;;  %2582 = vmatprep.subr.bf16.mxu1 %v2851_v0 }
 0x291   : > { %2564 = vmatprep.subr.bf16.mxu0 %v2851_v0 }
 0x293   : > { %2583 = vmatpush3.bf16.msra.mxu1 %v2721_v40 }
 0x294   : > { %2565 = vmatpush3.bf16.msra.mxu0 %v2720_v33  ;;  %2584 = vmatprep.subr.bf16.mxu1 %v2851_v0 }
 0x297   : > { %2585 = vmatpush3.bf16.msra.mxu1 %v2722_v41 }
 0x2c7   : > { %v1163_v42 = vpop.xlane.xlu0 %1162 }
 0x2c8   : > { %2779 = vrcp.f32 %v1163_v42 }
 0x2cb   : > { %v1167_v45 = vpop.xlane.xlu0 %1166 }
 0x2cc   : > { %v1165_v46 = vpop.xlane.xlu1 %1164 }
 0x2cd   : > { %2781 = vrcp.f32 %v1165_v46 }
 0x2ce   : > { %2783 = vrcp.f32 %v1167_v45 }
 0x2d0   : > { %v1169_v50 = vpop.xlane.xlu1 %1168 }
 0x2d1   : > { %2785 = vrcp.f32 %v1169_v50 }
 0x2d2   : > { %v2780_v51 = vpop.eup %2779 }
 0x2d3   : > { %v1198_v58 = vmul.f32 %v2780_v51, %v3196_v9 }
 0x2d7   : > { %v2782_v55 = vpop.eup %2781 }
 0x2d8   : > { %v1199_v60 = vmul.f32 %v2782_v55, %v3208_v16  ;;  %v2784_v61 = vpop.eup %2783 }
 0x2d9   : > { %v1200_v63 = vmul.f32 %v2784_v61, %v3205_v28 }
 0x2da   : > { %v1208_v62 = vpack.c.bf16 %v1199_v60, %v1198_v58 }
 0x2db   : > { %v2786_v0 = vpop.eup %2785 }
 0x2dc   : > { %2567 = vmatmul.mubr.bf16.vlgmr.msra.gmra.mrb[28].mxu0 %v1208_v62  ;;  %v1201_v1 = vmul.f32 %v2786_v0, %v3215_v31 }
 0x2de   : > { %v1209_v2 = vpack.c.bf16 %v1201_v1, %v1200_v63 }
 0x2e0   : > { %2587 = vmatmul.mubr.bf16.vlgmr.msra.gmra.mrb[28].mxu1 %v1209_v2 }
 0x309   : > { %v1292_v44 = vpop.f32.mrb[16].mxu0 }
 0x30a   : > { %v2252_v43 = vpack.c.bf16 %v1292_v44, %v1292_v44  ;;  %v2448_v3 = vpop.f32.mrb[17].mxu0 }
 0x30b   : > { %v1295_v9 = vpop.f32.mrb[18].mxu0 }
 0x30c   : > { %1987 = vst.msk [vmem:[%s3324_s30] sm:$0xf] %vm1986_vm2, %v2252_v43  ;;  %v2253_v28 = vpack.c.bf16 %v1295_v9, %v1295_v9  ;;  %v2449_v16 = vpop.f32.mrb[19].mxu0 }
 0x30d   : > { %v1381_v31 = vpop.f32.mrb[16].mxu1 }
 0x30e   : > { %v2254_v35 = vpack.c.bf16 %v1381_v31, %v1381_v31  ;;  %v2468_v47 = vpop.f32.mrb[17].mxu1  ;;  %1988 = vst.msk [vmem:[%s3324_s30 + $0x4] sm:$0xf] %vm1986_vm2, %v2253_v28 }
 0x30f   : > { %v1384_v4 = vpop.f32.mrb[18].mxu1 }
 0x310   : > { %1989 = vst.msk [vmem:[%s3324_s30 + $0x8] sm:$0xf] %vm1986_vm2, %v2254_v35  ;;  %v2255_v5 = vpack.c.bf16 %v1384_v4, %v1384_v4  ;;  %v2469_v49 = vpop.f32.mrb[19].mxu1 }
 0x312   : > { %1990 = vst.msk [vmem:[%s3324_s30 + $0xc] sm:$0xf] %vm1986_vm2, %v2255_v5 }
 0x32a   : > { %v1470_v6 = vpop.f32.mrb[20].mxu0 }
 0x32b   : > { %v2256_v54 = vpack.c.bf16 %v1470_v6, %v1470_v6  ;;  %v2488_v8 = vpop.f32.mrb[21].mxu0 }
 0x32c   : > { %v1473_v11 = vpop.f32.mrb[22].mxu0 }
 0x32d   : > { %1991 = vst.msk [vmem:[%s3324_s30 + $0x10] sm:$0xf] %vm1986_vm2, %v2256_v54  ;;  %v2257_v57 = vpack.c.bf16 %v1473_v11, %v1473_v11  ;;  %v2489_v56 = vpop.f32.mrb[23].mxu0  ;;  %v1559_v12 = vpop.f32.mrb[20].mxu1 }
 0x32e   : > { %v2258_v17 = vpack.c.bf16 %v1559_v12, %v1559_v12  ;;  %v2508_v18 = vpop.f32.mrb[21].mxu1 }
 0x32f   : > { %1992 = vst.msk [vmem:[%s3324_s30 + $0x14] sm:$0xf] %vm1986_vm2, %v2257_v57  ;;  %v1562_v10 = vpop.f32.mrb[22].mxu1 }
 0x330   : > { %1993 = vst.msk [vmem:[%s3324_s30 + $0x18] sm:$0xf] %vm1986_vm2, %v2258_v17  ;;  %v2259_v20 = vpack.c.bf16 %v1562_v10, %v1562_v10  ;;  %v2509_v21 = vpop.f32.mrb[23].mxu1 }
 0x332   : > { %1994 = vst.msk [vmem:[%s3324_s30 + $0x1c] sm:$0xf] %vm1986_vm2, %v2259_v20 }
 0x34a   : > { %v1648_v22 = vpop.f32.mrb[24].mxu0 }
 0x34b   : > { %v2260_v23 = vpack.c.bf16 %v1648_v22, %v1648_v22  ;;  %v2528_v13 = vpop.f32.mrb[25].mxu0 }
 0x34c   : > { %v1651_v15 = vpop.f32.mrb[26].mxu0 }
 0x34d   : > { %1995 = vst.msk [vmem:[%s3324_s30 + $0x20] sm:$0xf] %vm1986_vm2, %v2260_v23  ;;  %v2261_v14 = vpack.c.bf16 %v1651_v15, %v1651_v15  ;;  %v2529_v24 = vpop.f32.mrb[27].mxu0  ;;  %v1737_v25 = vpop.f32.mrb[24].mxu1 }
 0x34e   : > { %v2262_v26 = vpack.c.bf16 %v1737_v25, %v1737_v25  ;;  %v2548_v19 = vpop.f32.mrb[25].mxu1 }
 0x34f   : > { %1996 = vst.msk [vmem:[%s3324_s30 + $0x24] sm:$0xf] %vm1986_vm2, %v2261_v14  ;;  %v1740_v7 = vpop.f32.mrb[26].mxu1 }
 0x350   : > { %1997 = vst.msk [vmem:[%s3324_s30 + $0x28] sm:$0xf] %vm1986_vm2, %v2262_v26  ;;  %v2263_v52 = vpack.c.bf16 %v1740_v7, %v1740_v7  ;;  %v2549_v29 = vpop.f32.mrb[27].mxu1 }
 0x352   : > { %1998 = vst.msk [vmem:[%s3324_s30 + $0x2c] sm:$0xf] %vm1986_vm2, %v2263_v52 }
 0x3af   : > { %v1826_v48 = vpop.f32.mrb[28].mxu0 }
 0x3b0   : > { %v2264_v53 = vpack.c.bf16 %v1826_v48, %v1826_v48  ;;  %v2568_v59 = vpop.f32.mrb[29].mxu0 }
 0x3b1   : > { %v1829_v30 = vpop.f32.mrb[30].mxu0 }
 0x3b2   : > { %1999 = vst.msk [vmem:[%s3324_s30 + $0x30] sm:$0xf] %vm1986_vm2, %v2264_v53  ;;  %v2265_v34 = vpack.c.bf16 %v1829_v30, %v1829_v30  ;;  %v2569_v27 = vpop.f32.mrb[31].mxu0 }
 0x3b3   : > { %v1915_v36 = vpop.f32.mrb[28].mxu1 }
 0x3b4   : > { %2000 = vst.msk [vmem:[%s3324_s30 + $0x34] sm:$0xf] %vm1986_vm2, %v2265_v34  ;;  %v2266_v37 = vpack.c.bf16 %v1915_v36, %v1915_v36  ;;  %v2588_v38 = vpop.f32.mrb[29].mxu1 }
 0x3b5   : > { %v1918_v32 = vpop.f32.mrb[30].mxu1 }
 0x3b6   : > { %2001 = vst.msk [vmem:[%s3324_s30 + $0x38] sm:$0xf] %vm1986_vm2, %v2266_v37  ;;  %v2267_v39 = vpack.c.bf16 %v1918_v32, %v1918_v32  ;;  %v2589_v40 = vpop.f32.mrb[31].mxu1 }
 0x3b8   : > { %2002 = vst.msk [vmem:[%s3324_s30 + $0x3c] sm:$0xf] %vm1986_vm2, %v2267_v39 }
 0x3b9   : > { %2800 = shalt.err (!%p2797_p4)
}
 0x3ba   : > { %s2801_s14 = scalar_lea.hbm %s3359_s9, 1024  ;;  %s2805_s23 = scalar_lea.hbm %s3414_s4, 2048 }
 0x3bb   : > { %p2802_p7 = scmp.ne.s32.totalorder %s3359_s9, %s2801_s14  ;;  %p2806_p10 = scmp.lt.u32.totalorder %s3359_s9, %s3414_s4 }
 0x3bc   : > { %p2807_p11 = scmp.lt.u32.totalorder %s2805_s23, %s2801_s14  ;;  %p2809_p13 = scmp.lt.u32.totalorder %s2801_s14, %s3359_s9 }
 0x3bd   : > { %p2803_p8 = pnand %p2802_p7, %p2920_p5 }
 0x3be   : > { %p2808_p12 = por %p2807_p11, %p2806_p10 }
 0x3bf   : > { %p2804_p9 = pneg %p2803_p8 }
 0x3c0   : > { %p2810_p0 = por %p2809_p13, %p2808_p12 }
 0x3c2   : > { %p2811_p1 = pnand %p2810_p0, %p2804_p9 }
 0x3c4   : > { %2814 = shalt.err (!%p2811_p1)
}
 0x3c5   : > { %s2855_s29 = smov 64   ;;  %s2856_s30 = smov 4  }
 0x3c6   : > { %2590 = dma.vmem_to_hbm [thread:$0]  (%p2920_p5), %s3361_s6, 1024, %s3359_s9, %s3369_s19, %s2855_s29, %s2855_s29, %s2856_s30  }
 0x3c7 PF: > { %p2596_p2 = scmp.ge.s32.totalorder %s2849_s18, 2  ;;  %s2033_s5 = sand.u32 1, %s2837_s15  }
 0x3c8   : > { %s2034_s7 = scalar_lea.sflag [#allocation3], %s2033_s5 }
 0x3c9   : > { %p2593_p3 = pnand %p2596_p2, %p2924_p6 }
 0x3cb   : > { %2832 = dma.done.wait (!%p2593_p3), %s2034_s7, 1024  }
 0x3cc   : > { %2834 = vsyncadd (!%p2593_p3), %s2034_s7, 4294966272  ;;  %p14_p4 = scmp.ge.s32.totalorder %s2907_s21, 4   ;;  %s3417_s15 = smov %s2841_s16 }
 0x3cd   : > { %s3418_s16 = smov %s2845_s17  ;;  %s3419_s17 = smov %s2918_s24 }
 0x3ce   : > { %s3420_s18 = smov %s2907_s21  ;;  %16 = sbr.rel (!%p14_p4) target bundleno = 3 (0x3), region = 80 }
 0x3d5   :  { %2039 = vsyncpa [#allocation3], 1 }
 0x3d6   :  { %2041 = vsyncpa [#allocation3 + $0x1], 1 }

</bundles_post_ra>
